<compile_context>
chip_gen: v5e
topology: v5e:2x2
jax: 0.10.0
libtpu: 0.0.40
codegen_flags: <defaults>
</compile_context>

<pallas_src>
import functools

import jax
import jax.numpy as jnp
import numpy as np
from jax.experimental import pallas as pl
from jax.experimental.pallas import tpu as pltpu

EMBEDDING_SIZE = 32


# ----------------------------------------------------------------------------
# Pallas kernel: batched input projection + GRU recurrence + Linear + log_softmax
# ----------------------------------------------------------------------------
def _decoder_kernel(
    xflat_ref,      # (T*B, D)    GRU input (embedded ++ context), time-major, matmul dtype
    h0_ref,         # (B, HP)     f32  initial hidden state, lane-padded to HP
    wih_ref,        # (D, GP)     input->gates weight, per-gate 128-lane padded, transposed
    bih_ref,        # (1, GP)     f32  input-side gate biases, per-gate padded
    whh_ref,        # (HP, GP)    hidden->gates weight, per-gate padded, transposed
    bhh_ref,        # (1, GP)     f32  hidden-side gate biases, per-gate padded
    wout_ref,       # (HP, V)     output projection, transposed, rows H..HP zero
    bout_ref,       # (1, V)      f32
    logp_ref,       # (B, T*V)    f32  log-probs; timestep t at lanes [t*V, (t+1)*V)
    hout_ref,       # (B, H)      f32  final hidden
    hs_ref,         # (T*B, HP)   f32  VMEM scratch: per-step hidden states
    *,
    T: int,
    B: int,
    H: int,
    HP: int,
):
    f32 = jnp.float32
    mdt = wih_ref.dtype                        # matmul operand dtype (f32 or bf16)

    # Hidden-side weights/biases hoisted into vregs once (reused every step).
    whh = whh_ref[...]                          # (HP, GP)
    bhh = bhh_ref[...]                          # (1, GP) f32

    # Input-side gate pre-activations for ALL timesteps at once — off the
    # serial critical path.  One well-shaped MXU matmul instead of 3*T tiny ones.
    gx_all = (jnp.dot(xflat_ref[...], wih_ref[...],
                      preferred_element_type=f32)
              + bih_ref[...])                   # (T*B, GP) f32

    # GRU recurrence.  T is small & static -> fully unrolled Python loop so the
    # LLO scheduler sees across iterations; only the h-dependent matmul remains
    # on the per-step dependency chain.  All activation math stays in f32.
    h = h0_ref[...]                             # (B, HP) f32, padded lanes == 0
    for t in range(T):
        gx = gx_all[t * B:(t + 1) * B, :]       # (B, GP) static, lane-block aligned
        gh = jnp.dot(h.astype(mdt), whh,
                     preferred_element_type=f32) + bhh            # (B, GP) f32
        r = jax.nn.sigmoid(gx[:, 0:HP] + gh[:, 0:HP])
        z = jax.nn.sigmoid(gx[:, HP:2 * HP] + gh[:, HP:2 * HP])
        n = jnp.tanh(gx[:, 2 * HP:3 * HP] + r * gh[:, 2 * HP:3 * HP])
        h = n + z * (h - n)                     # == (1-z)*n + z*h, one fewer vmul
        hs_ref[t * B:(t + 1) * B, :] = h        # sublane-aligned (B=8) vst

    hout_ref[...] = h[:, 0:H]

    # Batched output projection + numerically stable log_softmax over vocab for
    # all T*B rows (lane-dense vregs, single MXU matmul).
    h_all = hs_ref[...]                         # (T*B, HP) f32
    logits = (jnp.dot(h_all.astype(mdt), wout_ref[...],
                      preferred_element_type=f32)
              + bout_ref[...])                  # (T*B, V) f32
    m = jnp.max(logits, axis=-1, keepdims=True)
    lse = jnp.log(jnp.sum(jnp.exp(logits - m), axis=-1, keepdims=True)) + m
    logp = logits - lse                         # (T*B, V), time-major rows

    # Write directly in (B, T*V) layout: timestep t -> lanes [t*V, (t+1)*V).
    # 128-lane-aligned, unmasked stores; kills the post-kernel (T,B,V)->(B,T,V)
    # transpose (the largest tensor never makes an extra HBM round-trip).
    V = logp.shape[-1]
    for t in range(T):
        logp_ref[:, t * V:(t + 1) * V] = logp[t * B:(t + 1) * B, :]


# ----------------------------------------------------------------------------
# One-time weight repack: transpose + per-gate 128-lane padding (+ optional bf16)
# ----------------------------------------------------------------------------
def prepare_params(params, hidden_size, matmul_dtype=jnp.float32):
    H = hidden_size
    HP = ((H + 127) // 128) * 128          # per-gate lane block
    GP = 3 * HP
    V = params["w_out"].shape[0]
    E = params["embedding"].shape[1]
    D = E + 2 * H

    w_ih = np.asarray(params["w_ih"], np.float32)   # (3H, D), gate order r|z|n
    w_hh = np.asarray(params["w_hh"], np.float32)   # (3H, H)
    b_ih = np.asarray(params["b_ih"], np.float32)
    b_hh = np.asarray(params["b_hh"], np.float32)

    wih = np.zeros((D, GP), np.float32)
    whh = np.zeros((HP, GP), np.float32)
    bih = np.zeros((1, GP), np.float32)
    bhh = np.zeros((1, GP), np.float32)
    for g in range(3):
        wih[:, g * HP:g * HP + H] = w_ih[g * H:(g + 1) * H, :].T
        whh[:H, g * HP:g * HP + H] = w_hh[g * H:(g + 1) * H, :].T
        bih[0, g * HP:g * HP + H] = b_ih[g * H:(g + 1) * H]
        bhh[0, g * HP:g * HP + H] = b_hh[g * H:(g + 1) * H]

    wout = np.zeros((HP, V), np.float32)
    wout[:H, :] = np.asarray(params["w_out"], np.float32).T
    bout = np.asarray(params["b_out"], np.float32).reshape(1, V)

    return {
        "embedding": jnp.asarray(params["embedding"], jnp.float32),
        "wih": jnp.asarray(wih, matmul_dtype),
        "whh": jnp.asarray(whh, matmul_dtype),
        "wout": jnp.asarray(wout, matmul_dtype),
        "bih": jnp.asarray(bih),        # biases always f32 (added post-accumulate)
        "bhh": jnp.asarray(bhh),
        "bout": jnp.asarray(bout),
    }


# ----------------------------------------------------------------------------
# Wrapper: embedding + concat glue, single pallas_call
# ----------------------------------------------------------------------------
@jax.jit
def decoder_forward(prepped, input_context, hidden, word):
    """input_context: (B, T, 2H) f32, hidden: (1, B, H) f32, word: (B, T) i32."""
    B, T = word.shape
    H = hidden.shape[-1]
    HP, GP = prepped["whh"].shape
    V = prepped["wout"].shape[1]
    mdt = prepped["wih"].dtype

    # --- input glue (gather + concat, plain JAX) -----------------------------
    embedded = jnp.take(prepped["embedding"], word, axis=0)            # (B, T, E)
    x = jnp.concatenate([embedded, input_context.astype(jnp.float32)], axis=2)
    x_flat = jnp.transpose(x, (1, 0, 2)).reshape(T * B, -1).astype(mdt)  # time-major

    h0 = jnp.pad(hidden[0].astype(jnp.float32), ((0, 0), (0, HP - H)))  # (B, HP)

    vmem = pl.BlockSpec(memory_space=pltpu.MemorySpace.VMEM)
    kernel = functools.partial(_decoder_kernel, T=T, B=B, H=H, HP=HP)

    logp_flat, h_final = pl.pallas_call(
        kernel,
        out_shape=(
            jax.ShapeDtypeStruct((B, T * V), jnp.float32),
            jax.ShapeDtypeStruct((B, H), jnp.float32),
        ),
        in_specs=[vmem] * 8,
        out_specs=(vmem, vmem),
        scratch_shapes=[pltpu.VMEM((T * B, HP), jnp.float32)],
    )(x_flat, h0,
      prepped["wih"], prepped["bih"],
      prepped["whh"], prepped["bhh"],
      prepped["wout"], prepped["bout"])

    output = logp_flat.reshape(B, T, V)       # free reshape, no transpose
    return output, h_final[None]              # (B, T, V), (1, B, H)


# ----------------------------------------------------------------------------
# Pure-JAX reference (matches PyTorch nn.GRU / F.log_softmax semantics)
# ----------------------------------------------------------------------------
def reference_forward(params, input_context, hidden, word):
    H = hidden.shape[-1]
    emb = jnp.take(params["embedding"], word, axis=0)
    x = jnp.concatenate([emb, input_context], axis=2)
    h = hidden[0]
    w_ih, w_hh = params["w_ih"], params["w_hh"]
    b_ih, b_hh = params["b_ih"], params["b_hh"]
    outs = []
    for t in range(x.shape[1]):
        xt = x[:, t]
        gx = xt @ w_ih.T + b_ih
        gh = h @ w_hh.T + b_hh
        r = jax.nn.sigmoid(gx[:, :H] + gh[:, :H])
        z = jax.nn.sigmoid(gx[:, H:2 * H] + gh[:, H:2 * H])
        n = jnp.tanh(gx[:, 2 * H:] + r * gh[:, 2 * H:])
        h = (1.0 - z) * n + z * h
        logits = h @ params["w_out"].T + params["b_out"]
        outs.append(jax.nn.log_softmax(logits, axis=-1))
    return jnp.stack(outs, axis=1), h[None]


# ----------------------------------------------------------------------------
# Deterministic parameter init (shapes follow DecoderRNN.__init__)
# ----------------------------------------------------------------------------
def init_params(key, input_size, hidden_size):
    D = 2 * hidden_size + EMBEDDING_SIZE
    ks = jax.random.split(key, 7)
    s = 0.1
    return {
        "embedding": jax.random.normal(ks[0], (input_size, EMBEDDING_SIZE), jnp.float32) * s,
        "w_ih": jax.random.normal(ks[1], (3 * hidden_size, D), jnp.float32) * s,
        "w_hh": jax.random.normal(ks[2], (3 * hidden_size, hidden_size), jnp.float32) * s,
        "b_ih": jax.random.normal(ks[3], (3 * hidden_size,), jnp.float32) * s,
        "b_hh": jax.random.normal(ks[4], (3 * hidden_size,), jnp.float32) * s,
        "w_out": jax.random.normal(ks[5], (input_size, hidden_size), jnp.float32) * s,
        "b_out": jax.random.normal(ks[6], (input_size,), jnp.float32) * s,
    }


if __name__ == "__main__":
    INPUT_SIZE = 128   # vocab size
    HIDDEN = 32
    B, T = 8, 4

    key = jax.random.PRNGKey(0)
    pkey, ckey, hkey, wkey = jax.random.split(key, 4)

    params = init_params(pkey, INPUT_SIZE, HIDDEN)
    input_context = jax.random.normal(ckey, (B, T, 2 * HIDDEN), jnp.float32)
    hidden0 = jax.random.normal(hkey, (1, B, HIDDEN), jnp.float32)
    word = jax.random.randint(wkey, (B, T), 0, INPUT_SIZE, dtype=jnp.int32)

    ref_out, ref_h = reference_forward(params, input_context, hidden0, word)

    # --- f32 matmul path: exact PyTorch-f32 semantics, tight tolerance -------
    prepped_f32 = prepare_params(params, HIDDEN, matmul_dtype=jnp.float32)
    out, h_n = decoder_forward(prepped_f32, input_context, hidden0, word)
    out, h_n = jax.block_until_ready((out, h_n))
    np.testing.assert_allclose(np.asarray(out), np.asarray(ref_out), rtol=2e-4, atol=2e-4)
    np.testing.assert_allclose(np.asarray(h_n), np.asarray(ref_h), rtol=2e-4, atol=2e-4)
    assert out.shape == (B, T, INPUT_SIZE) and h_n.shape == (1, B, HIDDEN)

    # --- bf16 MXU-operand path (full-rate MXU on v6e/v7x), loose tolerance ---
    prepped_bf16 = prepare_params(params, HIDDEN, matmul_dtype=jnp.bfloat16)
    out_b, h_b = decoder_forward(prepped_bf16, input_context, hidden0, word)
    out_b, h_b = jax.block_until_ready((out_b, h_b))
    np.testing.assert_allclose(np.asarray(out_b), np.asarray(ref_out), rtol=5e-2, atol=5e-2)
    np.testing.assert_allclose(np.asarray(h_b), np.asarray(ref_h), rtol=5e-2, atol=5e-2)

    print("KERNEL_OK")
</pallas_src>

<mosaic_0001>
module attributes {stable_mosaic.version = 11 : i64} {
  func.func @_decoder_kernel(%arg0: memref<32x96xf32, #tpu.memory_space<vmem>>, %arg1: memref<8x128xf32, #tpu.memory_space<vmem>>, %arg2: memref<96x384xf32, #tpu.memory_space<vmem>>, %arg3: memref<1x384xf32, #tpu.memory_space<vmem>>, %arg4: memref<128x384xf32, #tpu.memory_space<vmem>>, %arg5: memref<1x384xf32, #tpu.memory_space<vmem>>, %arg6: memref<128x128xf32, #tpu.memory_space<vmem>>, %arg7: memref<1x128xf32, #tpu.memory_space<vmem>>, %arg8: memref<8x512xf32, #tpu.memory_space<vmem>>, %arg9: memref<8x32xf32, #tpu.memory_space<vmem>>, %arg10: memref<32x128xf32, #tpu.memory_space<vmem>>) attributes {dimension_semantics = [], scalar_prefetch = 0 : i64, scratch_operands = 1 : i64, tpu.core_type = #tpu.core_type<tc>} {
    %c0 = arith.constant 0 : index
    %c0_0 = arith.constant 0 : index
    %0 = vector.load %arg4[%c0, %c0_0] : memref<128x384xf32, #tpu.memory_space<vmem>>, vector<128x384xf32>
    %c0_1 = arith.constant 0 : index
    %c0_2 = arith.constant 0 : index
    %1 = vector.load %arg5[%c0_1, %c0_2] : memref<1x384xf32, #tpu.memory_space<vmem>>, vector<1x384xf32>
    %c0_3 = arith.constant 0 : index
    %c0_4 = arith.constant 0 : index
    %2 = vector.load %arg0[%c0_3, %c0_4] : memref<32x96xf32, #tpu.memory_space<vmem>>, vector<32x96xf32>
    %c0_5 = arith.constant 0 : index
    %c0_6 = arith.constant 0 : index
    %3 = vector.load %arg2[%c0_5, %c0_6] : memref<96x384xf32, #tpu.memory_space<vmem>>, vector<96x384xf32>
    %cst = arith.constant dense<0.000000e+00> : vector<32x384xf32>
    %4 = tpu.matmul %2, %3, %cst {dimension_numbers = #tpu.dot_dimension_numbers<[1], [0], [0], [1], [0, 0, 1, 1], [], []>} : vector<32x96xf32>, vector<96x384xf32>, vector<32x384xf32> -> vector<32x384xf32>
    %c0_7 = arith.constant 0 : index
    %c0_8 = arith.constant 0 : index
    %5 = vector.load %arg3[%c0_7, %c0_8] : memref<1x384xf32, #tpu.memory_space<vmem>>, vector<1x384xf32>
    %6 = vector.broadcast %5 : vector<1x384xf32> to vector<32x384xf32>
    %7 = arith.addf %4, %6 : vector<32x384xf32>
    %c0_9 = arith.constant 0 : index
    %c0_10 = arith.constant 0 : index
    %8 = vector.load %arg1[%c0_9, %c0_10] : memref<8x128xf32, #tpu.memory_space<vmem>>, vector<8x128xf32>
    %9 = vector.extract_strided_slice %7 {offsets = [0, 0], sizes = [8, 384], strides = [1, 1]} : vector<32x384xf32> to vector<8x384xf32>
    %cst_11 = arith.constant dense<0.000000e+00> : vector<8x384xf32>
    %10 = tpu.matmul %8, %0, %cst_11 {dimension_numbers = #tpu.dot_dimension_numbers<[1], [0], [0], [1], [0, 0, 1, 1], [], []>} : vector<8x128xf32>, vector<128x384xf32>, vector<8x384xf32> -> vector<8x384xf32>
    %11 = vector.broadcast %1 : vector<1x384xf32> to vector<8x384xf32>
    %12 = arith.addf %10, %11 : vector<8x384xf32>
    %13 = vector.extract_strided_slice %9 {offsets = [0, 0], sizes = [8, 128], strides = [1, 1]} : vector<8x384xf32> to vector<8x128xf32>
    %14 = vector.extract_strided_slice %12 {offsets = [0, 0], sizes = [8, 128], strides = [1, 1]} : vector<8x384xf32> to vector<8x128xf32>
    %15 = arith.addf %13, %14 : vector<8x128xf32>
    %16 = arith.negf %15 : vector<8x128xf32>
    %17 = math.exp %16 : vector<8x128xf32>
    %cst_12 = arith.constant 1.000000e+00 : f32
    %18 = vector.broadcast %cst_12 : f32 to vector<8x128xf32>
    %19 = arith.addf %18, %17 : vector<8x128xf32>
    %20 = arith.divf %18, %19 : vector<8x128xf32>
    %21 = vector.extract_strided_slice %9 {offsets = [0, 128], sizes = [8, 128], strides = [1, 1]} : vector<8x384xf32> to vector<8x128xf32>
    %22 = vector.extract_strided_slice %12 {offsets = [0, 128], sizes = [8, 128], strides = [1, 1]} : vector<8x384xf32> to vector<8x128xf32>
    %23 = arith.addf %21, %22 : vector<8x128xf32>
    %24 = arith.negf %23 : vector<8x128xf32>
    %25 = math.exp %24 : vector<8x128xf32>
    %cst_13 = arith.constant 1.000000e+00 : f32
    %26 = vector.broadcast %cst_13 : f32 to vector<8x128xf32>
    %27 = arith.addf %26, %25 : vector<8x128xf32>
    %28 = arith.divf %26, %27 : vector<8x128xf32>
    %29 = vector.extract_strided_slice %9 {offsets = [0, 256], sizes = [8, 128], strides = [1, 1]} : vector<8x384xf32> to vector<8x128xf32>
    %30 = vector.extract_strided_slice %12 {offsets = [0, 256], sizes = [8, 128], strides = [1, 1]} : vector<8x384xf32> to vector<8x128xf32>
    %31 = arith.mulf %20, %30 : vector<8x128xf32>
    %32 = arith.addf %29, %31 : vector<8x128xf32>
    %33 = math.tanh %32 : vector<8x128xf32>
    %34 = arith.subf %8, %33 : vector<8x128xf32>
    %35 = arith.mulf %28, %34 : vector<8x128xf32>
    %36 = arith.addf %33, %35 : vector<8x128xf32>
    %c0_14 = arith.constant 0 : index
    %c0_15 = arith.constant 0 : index
    %37 = vector.load %arg10[%c0_14, %c0_15] : memref<32x128xf32, #tpu.memory_space<vmem>>, vector<8x128xf32>
    tpu.vector_store %arg10[%c0_14, %c0_15], %36 {strides = array<i32>} : memref<32x128xf32, #tpu.memory_space<vmem>>, vector<8x128xf32>,
    %38 = vector.extract_strided_slice %7 {offsets = [8, 0], sizes = [8, 384], strides = [1, 1]} : vector<32x384xf32> to vector<8x384xf32>
    %cst_16 = arith.constant dense<0.000000e+00> : vector<8x384xf32>
    %39 = tpu.matmul %36, %0, %cst_16 {dimension_numbers = #tpu.dot_dimension_numbers<[1], [0], [0], [1], [0, 0, 1, 1], [], []>} : vector<8x128xf32>, vector<128x384xf32>, vector<8x384xf32> -> vector<8x384xf32>
    %40 = vector.broadcast %1 : vector<1x384xf32> to vector<8x384xf32>
    %41 = arith.addf %39, %40 : vector<8x384xf32>
    %42 = vector.extract_strided_slice %38 {offsets = [0, 0], sizes = [8, 128], strides = [1, 1]} : vector<8x384xf32> to vector<8x128xf32>
    %43 = vector.extract_strided_slice %41 {offsets = [0, 0], sizes = [8, 128], strides = [1, 1]} : vector<8x384xf32> to vector<8x128xf32>
    %44 = arith.addf %42, %43 : vector<8x128xf32>
    %45 = arith.negf %44 : vector<8x128xf32>
    %46 = math.exp %45 : vector<8x128xf32>
    %cst_17 = arith.constant 1.000000e+00 : f32
    %47 = vector.broadcast %cst_17 : f32 to vector<8x128xf32>
    %48 = arith.addf %47, %46 : vector<8x128xf32>
    %49 = arith.divf %47, %48 : vector<8x128xf32>
    %50 = vector.extract_strided_slice %38 {offsets = [0, 128], sizes = [8, 128], strides = [1, 1]} : vector<8x384xf32> to vector<8x128xf32>
    %51 = vector.extract_strided_slice %41 {offsets = [0, 128], sizes = [8, 128], strides = [1, 1]} : vector<8x384xf32> to vector<8x128xf32>
    %52 = arith.addf %50, %51 : vector<8x128xf32>
    %53 = arith.negf %52 : vector<8x128xf32>
    %54 = math.exp %53 : vector<8x128xf32>
    %cst_18 = arith.constant 1.000000e+00 : f32
    %55 = vector.broadcast %cst_18 : f32 to vector<8x128xf32>
    %56 = arith.addf %55, %54 : vector<8x128xf32>
    %57 = arith.divf %55, %56 : vector<8x128xf32>
    %58 = vector.extract_strided_slice %38 {offsets = [0, 256], sizes = [8, 128], strides = [1, 1]} : vector<8x384xf32> to vector<8x128xf32>
    %59 = vector.extract_strided_slice %41 {offsets = [0, 256], sizes = [8, 128], strides = [1, 1]} : vector<8x384xf32> to vector<8x128xf32>
    %60 = arith.mulf %49, %59 : vector<8x128xf32>
    %61 = arith.addf %58, %60 : vector<8x128xf32>
    %62 = math.tanh %61 : vector<8x128xf32>
    %63 = arith.subf %36, %62 : vector<8x128xf32>
    %64 = arith.mulf %57, %63 : vector<8x128xf32>
    %65 = arith.addf %62, %64 : vector<8x128xf32>
    %c8 = arith.constant 8 : index
    %c0_19 = arith.constant 0 : index
    %66 = vector.load %arg10[%c8, %c0_19] : memref<32x128xf32, #tpu.memory_space<vmem>>, vector<8x128xf32>
    tpu.vector_store %arg10[%c8, %c0_19], %65 {strides = array<i32>} : memref<32x128xf32, #tpu.memory_space<vmem>>, vector<8x128xf32>,
    %67 = vector.extract_strided_slice %7 {offsets = [16, 0], sizes = [8, 384], strides = [1, 1]} : vector<32x384xf32> to vector<8x384xf32>
    %cst_20 = arith.constant dense<0.000000e+00> : vector<8x384xf32>
    %68 = tpu.matmul %65, %0, %cst_20 {dimension_numbers = #tpu.dot_dimension_numbers<[1], [0], [0], [1], [0, 0, 1, 1], [], []>} : vector<8x128xf32>, vector<128x384xf32>, vector<8x384xf32> -> vector<8x384xf32>
    %69 = vector.broadcast %1 : vector<1x384xf32> to vector<8x384xf32>
    %70 = arith.addf %68, %69 : vector<8x384xf32>
    %71 = vector.extract_strided_slice %67 {offsets = [0, 0], sizes = [8, 128], strides = [1, 1]} : vector<8x384xf32> to vector<8x128xf32>
    %72 = vector.extract_strided_slice %70 {offsets = [0, 0], sizes = [8, 128], strides = [1, 1]} : vector<8x384xf32> to vector<8x128xf32>
    %73 = arith.addf %71, %72 : vector<8x128xf32>
    %74 = arith.negf %73 : vector<8x128xf32>
    %75 = math.exp %74 : vector<8x128xf32>
    %cst_21 = arith.constant 1.000000e+00 : f32
    %76 = vector.broadcast %cst_21 : f32 to vector<8x128xf32>
    %77 = arith.addf %76, %75 : vector<8x128xf32>
    %78 = arith.divf %76, %77 : vector<8x128xf32>
    %79 = vector.extract_strided_slice %67 {offsets = [0, 128], sizes = [8, 128], strides = [1, 1]} : vector<8x384xf32> to vector<8x128xf32>
    %80 = vector.extract_strided_slice %70 {offsets = [0, 128], sizes = [8, 128], strides = [1, 1]} : vector<8x384xf32> to vector<8x128xf32>
    %81 = arith.addf %79, %80 : vector<8x128xf32>
    %82 = arith.negf %81 : vector<8x128xf32>
    %83 = math.exp %82 : vector<8x128xf32>
    %cst_22 = arith.constant 1.000000e+00 : f32
    %84 = vector.broadcast %cst_22 : f32 to vector<8x128xf32>
    %85 = arith.addf %84, %83 : vector<8x128xf32>
    %86 = arith.divf %84, %85 : vector<8x128xf32>
    %87 = vector.extract_strided_slice %67 {offsets = [0, 256], sizes = [8, 128], strides = [1, 1]} : vector<8x384xf32> to vector<8x128xf32>
    %88 = vector.extract_strided_slice %70 {offsets = [0, 256], sizes = [8, 128], strides = [1, 1]} : vector<8x384xf32> to vector<8x128xf32>
    %89 = arith.mulf %78, %88 : vector<8x128xf32>
    %90 = arith.addf %87, %89 : vector<8x128xf32>
    %91 = math.tanh %90 : vector<8x128xf32>
    %92 = arith.subf %65, %91 : vector<8x128xf32>
    %93 = arith.mulf %86, %92 : vector<8x128xf32>
    %94 = arith.addf %91, %93 : vector<8x128xf32>
    %c16 = arith.constant 16 : index
    %c0_23 = arith.constant 0 : index
    %95 = vector.load %arg10[%c16, %c0_23] : memref<32x128xf32, #tpu.memory_space<vmem>>, vector<8x128xf32>
    tpu.vector_store %arg10[%c16, %c0_23], %94 {strides = array<i32>} : memref<32x128xf32, #tpu.memory_space<vmem>>, vector<8x128xf32>,
    %96 = vector.extract_strided_slice %7 {offsets = [24, 0], sizes = [8, 384], strides = [1, 1]} : vector<32x384xf32> to vector<8x384xf32>
    %cst_24 = arith.constant dense<0.000000e+00> : vector<8x384xf32>
    %97 = tpu.matmul %94, %0, %cst_24 {dimension_numbers = #tpu.dot_dimension_numbers<[1], [0], [0], [1], [0, 0, 1, 1], [], []>} : vector<8x128xf32>, vector<128x384xf32>, vector<8x384xf32> -> vector<8x384xf32>
    %98 = vector.broadcast %1 : vector<1x384xf32> to vector<8x384xf32>
    %99 = arith.addf %97, %98 : vector<8x384xf32>
    %100 = vector.extract_strided_slice %96 {offsets = [0, 0], sizes = [8, 128], strides = [1, 1]} : vector<8x384xf32> to vector<8x128xf32>
    %101 = vector.extract_strided_slice %99 {offsets = [0, 0], sizes = [8, 128], strides = [1, 1]} : vector<8x384xf32> to vector<8x128xf32>
    %102 = arith.addf %100, %101 : vector<8x128xf32>
    %103 = arith.negf %102 : vector<8x128xf32>
    %104 = math.exp %103 : vector<8x128xf32>
    %cst_25 = arith.constant 1.000000e+00 : f32
    %105 = vector.broadcast %cst_25 : f32 to vector<8x128xf32>
    %106 = arith.addf %105, %104 : vector<8x128xf32>
    %107 = arith.divf %105, %106 : vector<8x128xf32>
    %108 = vector.extract_strided_slice %96 {offsets = [0, 128], sizes = [8, 128], strides = [1, 1]} : vector<8x384xf32> to vector<8x128xf32>
    %109 = vector.extract_strided_slice %99 {offsets = [0, 128], sizes = [8, 128], strides = [1, 1]} : vector<8x384xf32> to vector<8x128xf32>
    %110 = arith.addf %108, %109 : vector<8x128xf32>
    %111 = arith.negf %110 : vector<8x128xf32>
    %112 = math.exp %111 : vector<8x128xf32>
    %cst_26 = arith.constant 1.000000e+00 : f32
    %113 = vector.broadcast %cst_26 : f32 to vector<8x128xf32>
    %114 = arith.addf %113, %112 : vector<8x128xf32>
    %115 = arith.divf %113, %114 : vector<8x128xf32>
    %116 = vector.extract_strided_slice %96 {offsets = [0, 256], sizes = [8, 128], strides = [1, 1]} : vector<8x384xf32> to vector<8x128xf32>
    %117 = vector.extract_strided_slice %99 {offsets = [0, 256], sizes = [8, 128], strides = [1, 1]} : vector<8x384xf32> to vector<8x128xf32>
    %118 = arith.mulf %107, %117 : vector<8x128xf32>
    %119 = arith.addf %116, %118 : vector<8x128xf32>
    %120 = math.tanh %119 : vector<8x128xf32>
    %121 = arith.subf %94, %120 : vector<8x128xf32>
    %122 = arith.mulf %115, %121 : vector<8x128xf32>
    %123 = arith.addf %120, %122 : vector<8x128xf32>
    %c24 = arith.constant 24 : index
    %c0_27 = arith.constant 0 : index
    %124 = vector.load %arg10[%c24, %c0_27] : memref<32x128xf32, #tpu.memory_space<vmem>>, vector<8x128xf32>
    tpu.vector_store %arg10[%c24, %c0_27], %123 {strides = array<i32>} : memref<32x128xf32, #tpu.memory_space<vmem>>, vector<8x128xf32>,
    %125 = vector.extract_strided_slice %123 {offsets = [0, 0], sizes = [8, 32], strides = [1, 1]} : vector<8x128xf32> to vector<8x32xf32>
    %c0_28 = arith.constant 0 : index
    %c0_29 = arith.constant 0 : index
    %126 = vector.load %arg9[%c0_28, %c0_29] : memref<8x32xf32, #tpu.memory_space<vmem>>, vector<8x32xf32>
    tpu.vector_store %arg9[%c0_28, %c0_29], %125 {strides = array<i32>} : memref<8x32xf32, #tpu.memory_space<vmem>>, vector<8x32xf32>,
    %c0_30 = arith.constant 0 : index
    %c0_31 = arith.constant 0 : index
    %127 = vector.load %arg10[%c0_30, %c0_31] : memref<32x128xf32, #tpu.memory_space<vmem>>, vector<32x128xf32>
    %c0_32 = arith.constant 0 : index
    %c0_33 = arith.constant 0 : index
    %128 = vector.load %arg6[%c0_32, %c0_33] : memref<128x128xf32, #tpu.memory_space<vmem>>, vector<128x128xf32>
    %cst_34 = arith.constant dense<0.000000e+00> : vector<32x128xf32>
    %129 = tpu.matmul %127, %128, %cst_34 {dimension_numbers = #tpu.dot_dimension_numbers<[1], [0], [0], [1], [0, 0, 1, 1], [], []>} : vector<32x128xf32>, vector<128x128xf32>, vector<32x128xf32> -> vector<32x128xf32>
    %c0_35 = arith.constant 0 : index
    %c0_36 = arith.constant 0 : index
    %130 = vector.load %arg7[%c0_35, %c0_36] : memref<1x128xf32, #tpu.memory_space<vmem>>, vector<1x128xf32>
    %131 = vector.broadcast %130 : vector<1x128xf32> to vector<32x128xf32>
    %132 = arith.addf %129, %131 : vector<32x128xf32>
    %cst_37 = arith.constant dense<0xFF800000> : vector<32xf32>
    %133 = vector.multi_reduction <maximumf>, %132, %cst_37 [1] : vector<32x128xf32> to vector<32xf32>
    %134 = vector.shape_cast %133 : vector<32xf32> to vector<32x1xf32>
    %135 = vector.broadcast %134 : vector<32x1xf32> to vector<32x128xf32>
    %136 = arith.subf %132, %135 : vector<32x128xf32>
    %137 = math.exp %136 : vector<32x128xf32>
    %cst_38 = arith.constant dense<0.000000e+00> : vector<32xf32>
    %138 = vector.multi_reduction <add>, %137, %cst_38 [1] : vector<32x128xf32> to vector<32xf32>
    %139 = vector.shape_cast %138 : vector<32xf32> to vector<32x1xf32>
    %140 = math.log %139 : vector<32x1xf32>
    %141 = arith.addf %140, %134 : vector<32x1xf32>
    %142 = vector.broadcast %141 : vector<32x1xf32> to vector<32x128xf32>
    %143 = arith.subf %132, %142 : vector<32x128xf32>
    %144 = vector.extract_strided_slice %143 {offsets = [0, 0], sizes = [8, 128], strides = [1, 1]} : vector<32x128xf32> to vector<8x128xf32>
    %c0_39 = arith.constant 0 : index
    %c0_40 = arith.constant 0 : index
    %145 = vector.load %arg8[%c0_39, %c0_40] : memref<8x512xf32, #tpu.memory_space<vmem>>, vector<8x128xf32>
    tpu.vector_store %arg8[%c0_39, %c0_40], %144 {strides = array<i32>} : memref<8x512xf32, #tpu.memory_space<vmem>>, vector<8x128xf32>,
    %146 = vector.extract_strided_slice %143 {offsets = [8, 0], sizes = [8, 128], strides = [1, 1]} : vector<32x128xf32> to vector<8x128xf32>
    %c0_41 = arith.constant 0 : index
    %c128 = arith.constant 128 : index
    %147 = vector.load %arg8[%c0_41, %c128] : memref<8x512xf32, #tpu.memory_space<vmem>>, vector<8x128xf32>
    tpu.vector_store %arg8[%c0_41, %c128], %146 {strides = array<i32>} : memref<8x512xf32, #tpu.memory_space<vmem>>, vector<8x128xf32>,
    %148 = vector.extract_strided_slice %143 {offsets = [16, 0], sizes = [8, 128], strides = [1, 1]} : vector<32x128xf32> to vector<8x128xf32>
    %c0_42 = arith.constant 0 : index
    %c256 = arith.constant 256 : index
    %149 = vector.load %arg8[%c0_42, %c256] : memref<8x512xf32, #tpu.memory_space<vmem>>, vector<8x128xf32>
    tpu.vector_store %arg8[%c0_42, %c256], %148 {strides = array<i32>} : memref<8x512xf32, #tpu.memory_space<vmem>>, vector<8x128xf32>,
    %150 = vector.extract_strided_slice %143 {offsets = [24, 0], sizes = [8, 128], strides = [1, 1]} : vector<32x128xf32> to vector<8x128xf32>
    %c0_43 = arith.constant 0 : index
    %c384 = arith.constant 384 : index
    %151 = vector.load %arg8[%c0_43, %c384] : memref<8x512xf32, #tpu.memory_space<vmem>>, vector<8x128xf32>
    tpu.vector_store %arg8[%c0_43, %c384], %150 {strides = array<i32>} : memref<8x512xf32, #tpu.memory_space<vmem>>, vector<8x128xf32>,
    return
  }
}

</mosaic_0001>

<bundles_post_ra>
// kernel: decoder_forward.1
= control target key start
LH: loop header
LB: loop body
LE: loop exit
PB: predicated region body
PF: predicated region fallthrough
CT: control target
= control target key end

     0   :  { %15 = vsyncpa [#allocation4], 0  ;;  %s1653_s0 = inlined_call_operand.vmem [shape: f32[32,96], index: 0, kind: input, shape index: {}]   ;;  %s1654_s1 = inlined_call_operand.vmem [shape: f32[8,128], index: 1, kind: input, shape index: {}]   ;;  %s1655_s2 = inlined_call_operand.hbm [shape: f32[96,384], index: 2, kind: input, shape index: {}]   ;;  %s1656_s3 = inlined_call_operand.vmem [shape: f32[1,384], index: 3, kind: input, shape index: {}]   ;;  %s1657_s4 = inlined_call_operand.vmem [shape: f32[128,384], index: 4, kind: input, shape index: {}]   ;;  %s1658_s5 = inlined_call_operand.vmem [shape: f32[1,384], index: 5, kind: input, shape index: {}]   ;;  %s1659_s6 = inlined_call_operand.vmem [shape: f32[128,128], index: 6, kind: input, shape index: {}]   ;;  %s1660_s7 = inlined_call_operand.vmem [shape: f32[1,128], index: 7, kind: input, shape index: {}]   ;;  %s1661_s8 = inlined_call_operand.vmem [shape: f32[8,512], index: 8, kind: output, shape index: {0}]   ;;  %s1662_s9 = inlined_call_operand.hbm [shape: f32[8,32], index: 9, kind: output, shape index: {1}]  }
   0x1   :  { %16 = vsyncpa [#allocation5], 0  ;;  %s25_s11 = sshll.u32 %s1655_s2, 4  ;;  %s938_s12 = smov [#allocation3]   ;;  %s26_s11 = int_to_ptr.hbm [resolvable:$true] %s25_s11 }
   0x2   :  { %s27_s13 = sshll.u32 %s938_s12, 4  ;;  %s939_s14 = smov 384   ;;  %s28_s13 = int_to_ptr.vmem [resolvable:$true] %s27_s13 }
   0x3   :  { %s940_s15 = smov 24  }
   0x4   :  { %33 = dma.hbm_to_vmem [thread:$0]  %s26_s11, 4608, %s28_s13, [#allocation4], %s939_s14, %s939_s14, %s940_s15  }
   0x5   :  { %934 = dma.done.wait [#allocation4], 4608  }
   0x6   :  { %935 = vsyncadd [#allocation4], 4294962688  ;;  %v134_v0 = vld [vmem:[#allocation3 + $0x108] sm:$0xff]  ;;  %v131_v2 = vld [vmem:[#allocation3 + $0xf0] sm:$0xff]  ;;  %vm145_vm0 = vcmask 785408   ;;  %s941_s18 = smov [#allocation6]  }
   0x7   :  { %v998_v1 = vld [vmem:[%s1657_s4 + $0x168] sm:$0xff]  ;;  %162 = vmatpush.msra.mxu0 %v134_v0  ;;  %v1004_v3 = vld [vmem:[%s1657_s4 + $0x150] sm:$0xff]  ;;  %v128_v4 = vld [vmem:[#allocation3 + $0xd8] sm:$0xff]  ;;  %s791_s19 = sshll.u32 %s941_s18, 4  ;;  %s793_s21 = sshll.u32 %s1662_s9, 4  ;;  %s792_s19 = int_to_ptr.vmem [resolvable:$true] %s791_s19  ;;  %s794_s21 = int_to_ptr.hbm [resolvable:$true] %s793_s21 }
   0x8   :  { %253 = vmatpush.msra.mxu3 %v998_v1  ;;  %v1009_v5 = vld [vmem:[%s1657_s4 + $0x138] sm:$0xff]  ;;  %v125_v6 = vld [vmem:[#allocation3 + $0xc0] sm:$0xff]  ;;  %v135_v8 = vld [vmem:[#allocation3 + $0x110] sm:$0xff] }
   0x9   :  { %163 = vmatpush.msra.mxu0 %v131_v2  ;;  %v1015_v7 = vld [vmem:[%s1657_s4 + $0x120] sm:$0xff]  ;;  %v132_v9 = vld [vmem:[#allocation3 + $0xf8] sm:$0xff]  ;;  %v122_v10 = vld [vmem:[#allocation3 + $0xa8] sm:$0xff]  ;;  %191 = vmatpush.msra.mxu1 %v135_v8 }
   0xa   :  { %254 = vmatpush.msra.mxu3 %v1004_v3  ;;  %v1021_v11 = vld [vmem:[%s1657_s4 + $0x108] sm:$0xff]  ;;  %v129_v12 = vld [vmem:[#allocation3 + $0xe0] sm:$0xff]  ;;  %v119_v13 = vld [vmem:[#allocation3 + $0x90] sm:$0xff] }
   0xb   :  { %164 = vmatpush.msra.mxu0 %v128_v4  ;;  %v1027_v14 = vld [vmem:[%s1657_s4 + $0xf0] sm:$0xff]  ;;  %192 = vmatpush.msra.mxu1 %v132_v9  ;;  %v126_v15 = vld [vmem:[#allocation3 + $0xc8] sm:$0xff]  ;;  %v116_v16 = vld [vmem:[#allocation3 + $0x78] sm:$0xff] }
   0xc   :  { %255 = vmatpush.msra.mxu3 %v1009_v5  ;;  %v1033_v17 = vld [vmem:[%s1657_s4 + $0xd8] sm:$0xff]  ;;  %v123_v18 = vld [vmem:[#allocation3 + $0xb0] sm:$0xff]  ;;  %v113_v19 = vld [vmem:[#allocation3 + $0x60] sm:$0xff] }
   0xd   :  { %165 = vmatpush.msra.mxu0 %v125_v6  ;;  %193 = vmatpush.msra.mxu1 %v129_v12  ;;  %v1039_v20 = vld [vmem:[%s1657_s4 + $0xc0] sm:$0xff]  ;;  %v120_v21 = vld [vmem:[#allocation3 + $0x98] sm:$0xff]  ;;  %v110_v22 = vld [vmem:[#allocation3 + $0x48] sm:$0xff] }
   0xe   :  { %256 = vmatpush.msra.mxu3 %v1015_v7  ;;  %v1045_v23 = vld [vmem:[%s1657_s4 + $0xa8] sm:$0xff]  ;;  %v117_v24 = vld [vmem:[#allocation3 + $0x80] sm:$0xff]  ;;  %v107_v25 = vld [vmem:[#allocation3 + $0x30] sm:$0xff] }
   0xf   :  { %166 = vmatpush.msra.mxu0 %v122_v10  ;;  %194 = vmatpush.msra.mxu1 %v126_v15  ;;  %v1051_v26 = vld [vmem:[%s1657_s4 + $0x90] sm:$0xff]  ;;  %v114_v27 = vld [vmem:[#allocation3 + $0x68] sm:$0xff]  ;;  %v104_v28 = vld [vmem:[#allocation3 + $0x18] sm:$0xff] }
  0x10   :  { %257 = vmatpush.msra.mxu3 %v1021_v11  ;;  %v1057_v29 = vld [vmem:[%s1657_s4 + $0x78] sm:$0xff]  ;;  %v111_v31 = vld [vmem:[#allocation3 + $0x50] sm:$0xff]  ;;  %v133_v32 = vld [vmem:[#allocation3 + $0x100] sm:$0xff] }
  0x11   :  { %167 = vmatpush.msra.mxu0 %v119_v13  ;;  %195 = vmatpush.msra.mxu1 %v123_v18  ;;  %v136_v30 = vld [vmem:[#allocation3 + $0x118] sm:$0xff]  ;;  %v101_v33 = vld [vmem:[#allocation3] sm:$0xff]  ;;  %v1074_v37 = vld [vmem:[%s1657_s4 + $0x170] sm:$0xff] }
  0x12   :  { %258 = vmatpush.msra.mxu3 %v1027_v14  ;;  %v1063_v34 = vld [vmem:[%s1657_s4 + $0x60] sm:$0xff]  ;;  %220 = vmatpush.msra.mxu2 %v136_v30  ;;  %v108_v36 = vld [vmem:[#allocation3 + $0x38] sm:$0xff]  ;;  %v1079_v38 = vld [vmem:[%s1657_s4 + $0x48] sm:$0xff] }
  0x13   :  { %168 = vmatpush.msra.mxu0 %v116_v16  ;;  %196 = vmatpush.msra.mxu1 %v120_v21  ;;  %v1069_v35 = vld [vmem:[%s1653_s0] sm:$0xff]  ;;  %v130_v40 = vld [vmem:[#allocation3 + $0xe8] sm:$0xff]  ;;  %v1087_v41 = vld [vmem:[%s1657_s4 + $0x158] sm:$0xff] }
  0x14   :  { %259 = vmatpush.msra.mxu3 %v1033_v17  ;;  %221 = vmatpush.msra.mxu2 %v133_v32  ;;  %v105_v39 = vld [vmem:[#allocation3 + $0x20] sm:$0xff]  ;;  %v1092_v42 = vld [vmem:[%s1657_s4 + $0x30] sm:$0xff]  ;;  %v102_v43 = vld [vmem:[#allocation3 + $0x8] sm:$0xff] }
  0x15   :  { %169 = vmatpush.msra.mxu0 %v113_v19  ;;  %197 = vmatpush.msra.mxu1 %v117_v24  ;;  %v127_v44 = vld [vmem:[#allocation3 + $0xd0] sm:$0xff]  ;;  %v1099_v45 = vld [vmem:[%s1657_s4 + $0x140] sm:$0xff]  ;;  %v1104_v46 = vld [vmem:[%s1657_s4 + $0x18] sm:$0xff] }
  0x16   :  { %260 = vmatpush.msra.mxu3 %v1039_v20  ;;  %222 = vmatpush.msra.mxu2 %v130_v40  ;;  %v124_v47 = vld [vmem:[#allocation3 + $0xb8] sm:$0xff]  ;;  %v1111_v48 = vld [vmem:[%s1657_s4 + $0x128] sm:$0xff]  ;;  %v1116_v49 = vld [vmem:[%s1657_s4] sm:$0xff] }
  0x17   :  { %170 = vmatpush.msra.mxu0 %v110_v22  ;;  %198 = vmatpush.msra.mxu1 %v114_v27  ;;  %v1123_v50 = vld [vmem:[%s1653_s0 + $0x8] sm:$0xff]  ;;  %v1128_v51 = vld [vmem:[%s1654_s1] sm:$0xff]  ;;  %v1133_v52 = vld [vmem:[%s1657_s4 + $0x110] sm:$0xff] }
  0x18   :  { %261 = vmatpush.msra.mxu3 %v1045_v23  ;;  %223 = vmatpush.msra.mxu2 %v127_v44  ;;  %v1140_v53 = vld [vmem:[%s1657_s4 + $0x178] sm:$0xff]  ;;  %v121_v54 = vld [vmem:[#allocation3 + $0xa0] sm:$0xff]  ;;  %v118_v57 = vld [vmem:[#allocation3 + $0x88] sm:$0xff] }
  0x19   :  { %171 = vmatpush.msra.mxu0 %v107_v25  ;;  %199 = vmatpush.msra.mxu1 %v111_v31  ;;  %v1150_v55 = vld [vmem:[%s1657_s4 + $0xf8] sm:$0xff]  ;;  %v1155_v56 = vld [vmem:[%s1657_s4 + $0x160] sm:$0xff]  ;;  %v1167_v59 = vld [vmem:[%s1657_s4 + $0x148] sm:$0xff] }
  0x1a   :  { %262 = vmatpush.msra.mxu3 %v1051_v26  ;;  %224 = vmatpush.msra.mxu2 %v124_v47  ;;  %v1162_v58 = vld [vmem:[%s1657_s4 + $0xe0] sm:$0xff]  ;;  %v115_v60 = vld [vmem:[#allocation3 + $0x70] sm:$0xff]  ;;  %v1175_v61 = vld [vmem:[%s1657_s4 + $0xc8] sm:$0xff] }
  0x1b   :  { %172 = vmatpush.msra.mxu0 %v104_v28  ;;  %200 = vmatpush.msra.mxu1 %v108_v36  ;;  %v1180_v62 = vld [vmem:[%s1657_s4 + $0x130] sm:$0xff]  ;;  %v112_v0 = vld [vmem:[#allocation3 + $0x58] sm:$0xff]  ;;  %v109_v6 = vld [vmem:[#allocation3 + $0x40] sm:$0xff] }
  0x1c   :  { %263 = vmatpush.msra.mxu3 %v1057_v29  ;;  %225 = vmatpush.msra.mxu2 %v121_v54  ;;  %v1187_v63 = vld [vmem:[%s1653_s0 + $0x10] sm:$0xff]  ;;  %v1200_v4 = vld [vmem:[%s1657_s4 + $0x118] sm:$0xff]  ;;  %v1214_v9 = vld [vmem:[%s1657_s4 + $0x100] sm:$0xff] }
  0x1d   :  { %173 = vmatpush.msra.mxu0 %v101_v33  ;;  %201 = vmatpush.msra.mxu1 %v105_v39  ;;  %v1193_v2 = vld [vmem:[%s1657_s4 + $0xb0] sm:$0xff]  ;;  %v1209_v8 = vld [vmem:[%s1657_s4 + $0x98] sm:$0xff]  ;;  %v106_v10 = vld [vmem:[#allocation3 + $0x28] sm:$0xff] }
  0x1e   :  { %264 = vmatpush.msra.mxu3 %v1063_v34  ;;  %805 = vmatmul.msk.f32.vlgmr.msra.gmra.mxu0 %vm145_vm0, %v1069_v35  ;;  %v1221_v12 = vld [vmem:[%s1657_s4 + $0x80] sm:$0xff]  ;;  %v1226_v13 = vld [vmem:[%s1657_s4 + $0xe8] sm:$0xff]  ;;  %v103_v15 = vld [vmem:[#allocation3 + $0x10] sm:$0xff] }
  0x1f   :  { %273 = vmatpush.msrb.mxu0 %v1074_v37  ;;  %202 = vmatpush.msra.mxu1 %v102_v43  ;;  %v1234_v16 = vld [vmem:[%s1657_s4 + $0x68] sm:$0xff]  ;;  %v1239_v18 = vld [vmem:[%s1657_s4 + $0xd0] sm:$0xff]  ;;  %v1246_v19 = vld [vmem:[%s1653_s0 + $0x18] sm:$0xff] }
  0x20   :  { %265 = vmatpush.msra.mxu3 %v1079_v38  ;;  %809 = vmatmul.msk.f32.vlgmr.msra.gmra.mxu1 %vm145_vm0, %v1069_v35  ;;  %v1252_v21 = vld [vmem:[%s1657_s4 + $0x50] sm:$0xff]  ;;  %v1259_v22 = vld [vmem:[%s1657_s4 + $0xb8] sm:$0xff]  ;;  %v1273_v25 = vld [vmem:[%s1657_s4 + $0xa0] sm:$0xff] }
  0x21   :  { %274 = vmatpush.msrb.mxu0 %v1087_v41  ;;  %293 = vmatpush.msrb.mxu1 %v1140_v53  ;;  %v1268_v24 = vld [vmem:[%s1657_s4 + $0x38] sm:$0xff]  ;;  %v1282_v27 = vld [vmem:[%s1657_s4 + $0x20] sm:$0xff]  ;;  %v1287_v28 = vld [vmem:[%s1657_s4 + $0x88] sm:$0xff] }
  0x22   :  { %266 = vmatpush.msra.mxu3 %v1092_v42  ;;  %226 = vmatpush.msra.mxu2 %v118_v57  ;;  %v1296_v30 = vld [vmem:[%s1657_s4 + $0x8] sm:$0xff]  ;;  %v1301_v31 = vld [vmem:[%s1657_s4 + $0x70] sm:$0xff]  ;;  %v1312_v32 = vld [vmem:[%s1657_s4 + $0x58] sm:$0xff] }
  0x23   :  { %275 = vmatpush.msrb.mxu0 %v1099_v45  ;;  %294 = vmatpush.msrb.mxu1 %v1155_v56  ;;  %v1321_v33 = vld [vmem:[%s1657_s4 + $0x40] sm:$0xff]  ;;  %v1339_v36 = vld [vmem:[%s1657_s4 + $0x10] sm:$0xff] }
  0x24   :  { %267 = vmatpush.msra.mxu3 %v1104_v46  ;;  %227 = vmatpush.msra.mxu2 %v115_v60 }
  0x25   :  { %276 = vmatpush.msrb.mxu0 %v1111_v48  ;;  %295 = vmatpush.msrb.mxu1 %v1167_v59 }
  0x26   :  { %268 = vmatpush.msra.mxu3 %v1116_v49  ;;  %806 = vmatmul.msk.f32.gmra.mxu0 %vm145_vm0, %v1123_v50 }
  0x27   :  { %269 = vmatmul.f32.vlgmr.msra.gmra.mxu3 %v1128_v51  ;;  %277 = vmatpush.msrb.mxu0 %v1133_v52 }
  0x28   :  { %380 = vmatpush.msrb.mxu3 %v1074_v37  ;;  %810 = vmatmul.msk.f32.gmra.mxu1 %vm145_vm0, %v1123_v50 }
  0x29   :  { %278 = vmatpush.msrb.mxu0 %v1150_v55  ;;  %296 = vmatpush.msrb.mxu1 %v1180_v62 }
  0x2a   :  { %381 = vmatpush.msrb.mxu3 %v1087_v41  ;;  %228 = vmatpush.msra.mxu2 %v112_v0 }
  0x2b   :  { %279 = vmatpush.msrb.mxu0 %v1162_v58  ;;  %297 = vmatpush.msrb.mxu1 %v1200_v4 }
  0x2c   :  { %229 = vmatpush.msra.mxu2 %v109_v6  ;;  %382 = vmatpush.msrb.mxu3 %v1099_v45 }
  0x2d   :  { %280 = vmatpush.msrb.mxu0 %v1175_v61  ;;  %298 = vmatpush.msrb.mxu1 %v1214_v9 }
  0x2e   :  { %807 = vmatmul.msk.f32.gmra.mxu0 %vm145_vm0, %v1187_v63  ;;  %230 = vmatpush.msra.mxu2 %v106_v10 }
  0x2f   :  { %281 = vmatpush.msrb.mxu0 %v1193_v2  ;;  %383 = vmatpush.msrb.mxu3 %v1111_v48 }
  0x30   :  { %299 = vmatpush.msrb.mxu1 %v1226_v13  ;;  %231 = vmatpush.msra.mxu2 %v103_v15 }
  0x31   :  { %282 = vmatpush.msrb.mxu0 %v1209_v8  ;;  %811 = vmatmul.msk.f32.gmra.mxu1 %vm145_vm0, %v1187_v63 }
  0x32   :  { %300 = vmatpush.msrb.mxu1 %v1239_v18  ;;  %813 = vmatmul.msk.f32.vlgmr.msra.gmra.mxu2 %vm145_vm0, %v1069_v35  ;;  %v1329_v35 = vld [vmem:[%s1657_s4 + $0x28] sm:$0xff] }
  0x33   :  { %283 = vmatpush.msrb.mxu0 %v1221_v12  ;;  %360 = vmatpush.msrb.mxu2 %v998_v1 }
  0x34   :  { %301 = vmatpush.msrb.mxu1 %v1259_v22  ;;  %384 = vmatpush.msrb.mxu3 %v1133_v52 }
  0x35   :  { %284 = vmatpush.msrb.mxu0 %v1234_v16  ;;  %361 = vmatpush.msrb.mxu2 %v1004_v3 }
  0x36   :  { %808 = vmatmul.msk.f32.gmra.mxu0 %vm145_vm0, %v1246_v19  ;;  %302 = vmatpush.msrb.mxu1 %v1273_v25 }
  0x37   :  { %285 = vmatpush.msrb.mxu0 %v1252_v21  ;;  %385 = vmatpush.msrb.mxu3 %v1150_v55 }
  0x38   :  { %303 = vmatpush.msrb.mxu1 %v1287_v28  ;;  %362 = vmatpush.msrb.mxu2 %v1009_v5 }
  0x39   :  { %286 = vmatpush.msrb.mxu0 %v1268_v24  ;;  %812 = vmatmul.msk.f32.gmra.mxu1 %vm145_vm0, %v1246_v19 }
  0x3a   :  { %304 = vmatpush.msrb.mxu1 %v1301_v31  ;;  %363 = vmatpush.msrb.mxu2 %v1015_v7 }
  0x3b   :  { %287 = vmatpush.msrb.mxu0 %v1282_v27  ;;  %814 = vmatmul.msk.f32.gmra.mxu2 %vm145_vm0, %v1123_v50 }
  0x3c   :  { %305 = vmatpush.msrb.mxu1 %v1312_v32  ;;  %386 = vmatpush.msrb.mxu3 %v1162_v58 }
  0x3d   :  { %288 = vmatpush.msrb.mxu0 %v1296_v30  ;;  %364 = vmatpush.msrb.mxu2 %v1021_v11 }
  0x3e   :  { %289 = vmatmul.f32.vlgmr.msrb.gmra.mxu0 %v1128_v51  ;;  %306 = vmatpush.msrb.mxu1 %v1321_v33 }
  0x3f   :  { %400 = vmatpush.msra.mxu0 %v1140_v53  ;;  %387 = vmatpush.msrb.mxu3 %v1175_v61 }
  0x40   :  { %307 = vmatpush.msrb.mxu1 %v1329_v35  ;;  %365 = vmatpush.msrb.mxu2 %v1027_v14 }
  0x41   :  { %401 = vmatpush.msra.mxu0 %v1155_v56  ;;  %388 = vmatpush.msrb.mxu3 %v1193_v2 }
  0x42   :  { %308 = vmatpush.msrb.mxu1 %v1339_v36  ;;  %366 = vmatpush.msrb.mxu2 %v1033_v17 }
  0x43   :  { %402 = vmatpush.msra.mxu0 %v1167_v59  ;;  %309 = vmatmul.f32.vlgmr.msrb.gmra.mxu1 %v1128_v51 }
  0x44   :  { %389 = vmatpush.msrb.mxu3 %v1209_v8  ;;  %367 = vmatpush.msrb.mxu2 %v1039_v20 }
  0x45   :  { %403 = vmatpush.msra.mxu0 %v1180_v62  ;;  %467 = vmatpush.msra.mxu1 %v998_v1 }
  0x46   :  { %815 = vmatmul.msk.f32.gmra.mxu2 %vm145_vm0, %v1187_v63  ;;  %390 = vmatpush.msrb.mxu3 %v1221_v12 }
  0x47   :  { %404 = vmatpush.msra.mxu0 %v1200_v4  ;;  %368 = vmatpush.msrb.mxu2 %v1045_v23 }
  0x48   :  { %468 = vmatpush.msra.mxu1 %v1004_v3  ;;  %391 = vmatpush.msrb.mxu3 %v1234_v16 }
  0x49   :  { %405 = vmatpush.msra.mxu0 %v1214_v9  ;;  %369 = vmatpush.msrb.mxu2 %v1051_v26 }
  0x4a   :  { %469 = vmatpush.msra.mxu1 %v1009_v5  ;;  %392 = vmatpush.msrb.mxu3 %v1252_v21 }
  0x4b   :  { %406 = vmatpush.msra.mxu0 %v1226_v13  ;;  %370 = vmatpush.msrb.mxu2 %v1057_v29 }
  0x4c   :  { %470 = vmatpush.msra.mxu1 %v1015_v7  ;;  %393 = vmatpush.msrb.mxu3 %v1268_v24 }
  0x4d   :  { %407 = vmatpush.msra.mxu0 %v1239_v18  ;;  %371 = vmatpush.msrb.mxu2 %v1063_v34 }
  0x4e   :  { %816 = vmatmul.msk.f32.gmra.mxu2 %vm145_vm0, %v1246_v19  ;;  %394 = vmatpush.msrb.mxu3 %v1282_v27 }
  0x4f   :  { %408 = vmatpush.msra.mxu0 %v1259_v22  ;;  %372 = vmatpush.msrb.mxu2 %v1079_v38 }
  0x50   :  { %471 = vmatpush.msra.mxu1 %v1021_v11  ;;  %395 = vmatpush.msrb.mxu3 %v1296_v30 }
  0x51   :  { %409 = vmatpush.msra.mxu0 %v1273_v25  ;;  %373 = vmatpush.msrb.mxu2 %v1092_v42 }
  0x52   :  { %507 = vmatpush.msra.mxu3 %v1140_v53  ;;  %472 = vmatpush.msra.mxu1 %v1027_v14 }
  0x53   :  { %410 = vmatpush.msra.mxu0 %v1287_v28  ;;  %374 = vmatpush.msrb.mxu2 %v1104_v46 }
  0x54   :  { %508 = vmatpush.msra.mxu3 %v1155_v56  ;;  %473 = vmatpush.msra.mxu1 %v1033_v17 }
  0x55   :  { %411 = vmatpush.msra.mxu0 %v1301_v31  ;;  %375 = vmatpush.msrb.mxu2 %v1116_v49 }
  0x56   :  { %509 = vmatpush.msra.mxu3 %v1167_v59  ;;  %474 = vmatpush.msra.mxu1 %v1039_v20 }
  0x57   :  { %412 = vmatpush.msra.mxu0 %v1312_v32  ;;  %487 = vmatpush.msra.mxu2 %v1074_v37 }
  0x58   :  { %510 = vmatpush.msra.mxu3 %v1180_v62  ;;  %475 = vmatpush.msra.mxu1 %v1045_v23 }
  0x59   :  { %413 = vmatpush.msra.mxu0 %v1321_v33  ;;  %488 = vmatpush.msra.mxu2 %v1087_v41 }
  0x5a   :  { %511 = vmatpush.msra.mxu3 %v1200_v4  ;;  %476 = vmatpush.msra.mxu1 %v1051_v26 }
  0x5b   :  { %414 = vmatpush.msra.mxu0 %v1329_v35  ;;  %489 = vmatpush.msra.mxu2 %v1099_v45 }
  0x5c   :  { %512 = vmatpush.msra.mxu3 %v1214_v9  ;;  %477 = vmatpush.msra.mxu1 %v1057_v29 }
  0x5d   :  { %415 = vmatpush.msra.mxu0 %v1339_v36  ;;  %490 = vmatpush.msra.mxu2 %v1111_v48 }
  0x5e   :  { %513 = vmatpush.msra.mxu3 %v1226_v13  ;;  %478 = vmatpush.msra.mxu1 %v1063_v34 }
  0x5f   :  { %574 = vmatpush.msrb.mxu0 %v998_v1  ;;  %491 = vmatpush.msra.mxu2 %v1133_v52 }
  0x60   :  { %514 = vmatpush.msra.mxu3 %v1239_v18  ;;  %479 = vmatpush.msra.mxu1 %v1079_v38 }
  0x61   :  { %575 = vmatpush.msrb.mxu0 %v1004_v3  ;;  %492 = vmatpush.msra.mxu2 %v1150_v55  ;;  %v137_v3 = vld [vmem:[%s1656_s3] sm:$0x7] }
  0x62   :  { %515 = vmatpush.msra.mxu3 %v1259_v22  ;;  %480 = vmatpush.msra.mxu1 %v1092_v42  ;;  %v1491_v19 = vperm.slane %v137_v3, 2 }
  0x63   :  { %576 = vmatpush.msrb.mxu0 %v1009_v5  ;;  %493 = vmatpush.msra.mxu2 %v1162_v58 }
  0x64   :  { %516 = vmatpush.msra.mxu3 %v1273_v25  ;;  %481 = vmatpush.msra.mxu1 %v1104_v46 }
  0x65   :  { %577 = vmatpush.msrb.mxu0 %v1015_v7  ;;  %494 = vmatpush.msra.mxu2 %v1175_v61  ;;  %v139_v7 = vperm.slane %v137_v3, 0 }
  0x66   :  { %517 = vmatpush.msra.mxu3 %v1287_v28  ;;  %482 = vmatpush.msra.mxu1 %v1116_v49 }
  0x67   :  { %578 = vmatpush.msrb.mxu0 %v1021_v11  ;;  %495 = vmatpush.msra.mxu2 %v1193_v2 }
  0x68   :  { %518 = vmatpush.msra.mxu3 %v1301_v31  ;;  %594 = vmatpush.msrb.mxu1 %v1074_v37 }
  0x69   :  { %579 = vmatpush.msrb.mxu0 %v1027_v14  ;;  %496 = vmatpush.msra.mxu2 %v1209_v8  ;;  %v96_v14 = vld [vmem:[%s1658_s5] sm:$0x7] }
  0x6a   :  { %519 = vmatpush.msra.mxu3 %v1312_v32  ;;  %595 = vmatpush.msrb.mxu1 %v1087_v41 }
  0x6b   :  { %580 = vmatpush.msrb.mxu0 %v1033_v17  ;;  %497 = vmatpush.msra.mxu2 %v1221_v12 }
  0x6c   :  { %520 = vmatpush.msra.mxu3 %v1321_v33  ;;  %596 = vmatpush.msrb.mxu1 %v1099_v45 }
  0x6d   :  { %581 = vmatpush.msrb.mxu0 %v1039_v20  ;;  %498 = vmatpush.msra.mxu2 %v1234_v16  ;;  %v1471_v20 = vperm.slane %v96_v14, 0 }
  0x6e   :  { %521 = vmatpush.msra.mxu3 %v1329_v35  ;;  %597 = vmatpush.msrb.mxu1 %v1111_v48 }
  0x6f   :  { %582 = vmatpush.msrb.mxu0 %v1045_v23  ;;  %499 = vmatpush.msra.mxu2 %v1252_v21  ;;  %v140_v23 = vperm.slane %v137_v3, 1 }
  0x70   :  { %522 = vmatpush.msra.mxu3 %v1339_v36  ;;  %598 = vmatpush.msrb.mxu1 %v1133_v52 }
  0x71   :  { %583 = vmatpush.msrb.mxu0 %v1051_v26  ;;  %500 = vmatpush.msra.mxu2 %v1268_v24 }
  0x72   :  { %599 = vmatpush.msrb.mxu1 %v1150_v55 }
  0x73   :  { %584 = vmatpush.msrb.mxu0 %v1057_v29  ;;  %501 = vmatpush.msra.mxu2 %v1282_v27 }
  0x74   :  { %600 = vmatpush.msrb.mxu1 %v1162_v58 }
  0x75   :  { %585 = vmatpush.msrb.mxu0 %v1063_v34  ;;  %502 = vmatpush.msra.mxu2 %v1296_v30 }
  0x76   :  { %601 = vmatpush.msrb.mxu1 %v1175_v61 }
  0x77   :  { %586 = vmatpush.msrb.mxu0 %v1079_v38 }
  0x78   :  { %602 = vmatpush.msrb.mxu1 %v1193_v2  ;;  %v1487_v2 = vperm.slane %v96_v14, 2 }
  0x79   :  { %587 = vmatpush.msrb.mxu0 %v1092_v42 }
  0x7a   :  { %603 = vmatpush.msrb.mxu1 %v1209_v8 }
  0x7b   :  { %588 = vmatpush.msrb.mxu0 %v1104_v46 }
  0x7c   :  { %604 = vmatpush.msrb.mxu1 %v1221_v12 }
  0x7d   :  { %589 = vmatpush.msrb.mxu0 %v1116_v49  ;;  %v1482_v49 = vperm.slane %v96_v14, 1 }
  0x7e   :  { %605 = vmatpush.msrb.mxu1 %v1234_v16 }
  0x80   :  { %606 = vmatpush.msrb.mxu1 %v1252_v21 }
  0x82   :  { %607 = vmatpush.msrb.mxu1 %v1268_v24 }
  0x84   :  { %608 = vmatpush.msrb.mxu1 %v1282_v27 }
  0x86   :  { %609 = vmatpush.msrb.mxu1 %v1296_v30 }
  0x9b   :  { %v175_v1 = vpop.f32.mrf.mxu0 }
  0x9c   :  { %v176_v34 = vadd.f32 %v175_v1, %v139_v7 }
  0x9d   :  { %v204_v5 = vpop.f32.mrf.mxu1 }
  0x9e   :  { %v205_v57 = vadd.f32 %v204_v5, %v140_v23 }
  0xa3   :  { %v178_v11 = vpop.f32.mrf.mxu0 }
  0xa4   :  { %v1469_v17 = vadd.f32 %v178_v11, %v139_v7 }
  0xa5   :  { %v207_v29 = vpop.f32.mrf.mxu1 }
  0xa6   :  { %v1474_v38 = vadd.f32 %v207_v29, %v140_v23 }
  0xaa   :  { %v270_v26 = vpop.f32.mrf.mxu3 }
  0xab   :  { %v271_v37 = vadd.f32 %v270_v26, %v1471_v20  ;;  %v181_v39 = vpop.f32.mrf.mxu0 }
  0xac   :  { %v1476_v41 = vadd.f32 %v181_v39, %v139_v7 }
  0xad   :  { %v313_v40 = vadd.f32 %v271_v37, %v176_v34 }
  0xae   :  { %v210_v43 = vpop.f32.mrf.mxu1 }
  0xaf   :  { %v817_v42 = vmul.f32 -1.442695, %v313_v40  ;;  %v1478_v44 = vadd.f32 %v210_v43, %v140_v23 }
  0xb1   :  { %830 = vpow2.f32 %v817_v42 }
  0xb3   :  { %v184_v45 = vpop.f32.mrf.mxu0 }
  0xb4   :  { %v1480_v46 = vadd.f32 %v184_v45, %v139_v7 }
  0xb5   :  { %v233_v55 = vpop.f32.mrf.mxu2 }
  0xb6   :  { %v213_v50 = vpop.f32.mrf.mxu1  ;;  %v234_v11 = vadd.f32 %v233_v55, %v1491_v19 }
  0xb7   :  { %v831_v47 = vpop.eup %830  ;;  %v1484_v52 = vadd.f32 %v213_v50, %v140_v23 }
  0xb8   :  { %v317_v48 = vadd.f32 1.0, %v831_v47 }
  0xba   :  { %832 = vrcp.f32 %v317_v48  ;;  %v329_v10 = vand.u32 2147483648, %v317_v48  ;;  %v327_v16 = vand.u32 2147483647, %v317_v48  ;;  %vm323_vm2 = vweird.f32 %v317_v48 }
  0xbb   :  { %v290_v54 = vpop.f32.mrf.mxu0 }
  0xbc   :  { %v291_v58 = vadd.f32 %v290_v54, %v1482_v49  ;;  %v330_v27 = vor.u32 1.1754944e-38, %v329_v10  ;;  %vm328_vm4 = vcmp.eq.f32.partialorder %v327_v16, 8.507059e+37  ;;  %v689_v10 = vld [vmem:[%s1659_s6 + $0x10] sm:$0xff] }
  0xbe   :  { %v333_v60 = vadd.f32 %v291_v58, %v205_v57  ;;  %v1489_v12 = vpop.f32.mrf.mxu2 }
  0xc0   :  { %v833_v61 = vpop.eup %832  ;;  %v818_v63 = vmul.f32 -1.442695, %v333_v60  ;;  %v310_v8 = vpop.f32.mrf.mxu1  ;;  %v692_v60 = vld [vmem:[%s1659_s6 + $0x28] sm:$0xff] }
  0xc1   :  { %v319_v0 = vmul.f32 %v833_v61, %v317_v48  ;;  %vm324_vm1 = vweird.f32 %v833_v61  ;;  %v311_v21 = vadd.f32 %v310_v8, %v1487_v2  ;;  %v690_v8 = vld [vmem:[%s1659_s6 + $0x18] sm:$0xff] }
  0xc2   :  { %834 = vpow2.f32 %v818_v63  ;;  %vm325_vm3 = vmor %vm323_vm2, %vm324_vm1 }
  0xc3   :  { %v320_v6 = vsub.f32 1.0, %v319_v0 }
  0xc5   :  { %v321_v15 = vmul.f32 %v833_v61, %v320_v6  ;;  %v691_v6 = vld [vmem:[%s1659_s6 + $0x20] sm:$0xff] }
  0xc7   :  { %v322_v24 = vadd.f32 %v833_v61, %v321_v15  ;;  %v688_v15 = vld [vmem:[%s1659_s6 + $0x8] sm:$0xff] }
  0xc8   :  { %v835_v30 = vpop.eup %834 }
  0xc9   :  { %v326_v1 = vsel %vm325_vm3, %v833_v61, %v322_v24  ;;  %v337_v5 = vadd.f32 1.0, %v835_v30  ;;  %v239_v23 = vpop.f32.mrf.mxu2 }
  0xca   :  { %v331_v7 = vsel %vm328_vm4, %v330_v27, %v326_v1  ;;  %v1496_v3 = vadd.f32 %v239_v23, %v1491_v19  ;;  %v687_v27 = vld [vmem:[%s1659_s6] sm:$0xff] }
  0xcb   :  { %v353_v14 = vmul.f32 %v331_v7, %v311_v21  ;;  %836 = vrcp.f32 %v337_v5  ;;  %v349_v39 = vand.u32 2147483648, %v337_v5  ;;  %v347_v42 = vand.u32 2147483647, %v337_v5 }
  0xcc   :  { %vm343_vm6 = vweird.f32 %v337_v5 }
  0xcd   :  { %v354_v26 = vadd.f32 %v353_v14, %v234_v11  ;;  %v350_v47 = vor.u32 1.1754944e-38, %v349_v39  ;;  %vm348_vm8 = vcmp.eq.f32.partialorder %v347_v42, 8.507059e+37 }
  0xcf   :  { %838 = vtanh.f32 %v354_v26 }
  0xd1   :  { %v837_v29 = vpop.eup %836 }
  0xd2   :  { %v339_v34 = vmul.f32 %v837_v29, %v337_v5  ;;  %vm344_vm5 = vweird.f32 %v837_v29 }
  0xd3   :  { %vm345_vm7 = vmor %vm343_vm6, %vm344_vm5 }
  0xd4   :  { %v340_v37 = vsub.f32 1.0, %v339_v34 }
  0xd5   :  { %v839_v43 = vpop.eup %838 }
  0xd6   :  { %v341_v40 = vmul.f32 %v837_v29, %v340_v37  ;;  %v356_v50 = vsub.f32 %v1128_v51, %v839_v43  ;;  %v1520_v51 = vpop.f32.mrf.mxu2 }
  0xd8   :  { %v342_v45 = vadd.f32 %v837_v29, %v341_v40  ;;  %v237_v40 = vadd.f32 %v1489_v12, %v1491_v19 }
  0xda   :  { %v346_v48 = vsel %vm345_vm7, %v837_v29, %v342_v45 }
  0xdb   :  { %v351_v54 = vsel %vm348_vm8, %v350_v47, %v346_v48 }
  0xdc   :  { %v357_v55 = vmul.f32 %v356_v50, %v351_v54 }
  0xde   :  { %v1499_v57 = vadd.f32 %v839_v43, %v357_v55 }
  0xe0   :  { %376 = vmatmul.f32.vlgmr.msrb.gmra.mxu2 %v1499_v57  ;;  %396 = vmatmul.f32.vlgmr.msrb.gmra.mxu3 %v1499_v57 }
  0xe1   :  { %416 = vmatmul.f32.vlgmr.msra.gmra.mxu0 %v1499_v57  ;;  %614 = vmatpush.msrb.mxu2 %v1140_v53  ;;  %v702_v53 = vld [vmem:[%s1659_s6 + $0x78] sm:$0xff] }
  0xe2   :  { %707 = vmatpush.msrb.mxu3 %v702_v53 }
  0xe3   :  { %615 = vmatpush.msrb.mxu2 %v1155_v56  ;;  %v701_v56 = vld [vmem:[%s1659_s6 + $0x70] sm:$0xff] }
  0xe4   :  { %708 = vmatpush.msrb.mxu3 %v701_v56 }
  0xe5   :  { %616 = vmatpush.msrb.mxu2 %v1167_v59  ;;  %v700_v59 = vld [vmem:[%s1659_s6 + $0x68] sm:$0xff] }
  0xe6   :  { %709 = vmatpush.msrb.mxu3 %v700_v59 }
  0xe7   :  { %617 = vmatpush.msrb.mxu2 %v1180_v62 }
  0xe9   :  { %618 = vmatpush.msrb.mxu2 %v1200_v4 }
  0xeb   :  { %619 = vmatpush.msrb.mxu2 %v1214_v9  ;;  %v699_v9 = vld [vmem:[%s1659_s6 + $0x60] sm:$0xff] }
  0xec   :  { %710 = vmatpush.msrb.mxu3 %v699_v9 }
  0xed   :  { %620 = vmatpush.msrb.mxu2 %v1226_v13 }
  0xef   :  { %621 = vmatpush.msrb.mxu2 %v1239_v18 }
  0xf1   :  { %622 = vmatpush.msrb.mxu2 %v1259_v22  ;;  %v698_v22 = vld [vmem:[%s1659_s6 + $0x58] sm:$0xff] }
  0xf2   :  { %711 = vmatpush.msrb.mxu3 %v698_v22 }
  0xf3   :  { %623 = vmatpush.msrb.mxu2 %v1273_v25 }
  0xf5   :  { %624 = vmatpush.msrb.mxu2 %v1287_v28 }
  0xf7   :  { %625 = vmatpush.msrb.mxu2 %v1301_v31  ;;  %v697_v31 = vld [vmem:[%s1659_s6 + $0x50] sm:$0xff] }
  0xf8   :  { %712 = vmatpush.msrb.mxu3 %v697_v31 }
  0xf9   :  { %626 = vmatpush.msrb.mxu2 %v1312_v32 }
  0xfb   :  { %627 = vmatpush.msrb.mxu2 %v1321_v33 }
  0xfd   :  { %628 = vmatpush.msrb.mxu2 %v1329_v35  ;;  %v696_v35 = vld [vmem:[%s1659_s6 + $0x48] sm:$0xff] }
  0xfe   :  { %713 = vmatpush.msrb.mxu3 %v696_v35 }
  0xff   :  { %629 = vmatpush.msrb.mxu2 %v1339_v36  ;;  %v695_v36 = vld [vmem:[%s1659_s6 + $0x40] sm:$0xff] }
 0x100   :  { %714 = vmatpush.msrb.mxu3 %v695_v36 }
 0x15e   :  { %v417_v14 = vpop.f32.mrf.mxu0 }
 0x15f   :  { %v418_v34 = vadd.f32 %v417_v14, %v1487_v2 }
 0x163   :  { %v377_v62 = vpop.f32.mrf.mxu2  ;;  %v397_v4 = vpop.f32.mrf.mxu3 }
 0x164   :  { %v378_v13 = vadd.f32 %v377_v62, %v1471_v20  ;;  %v398_v18 = vadd.f32 %v397_v4, %v1482_v49 }
 0x166   :  { %v420_v25 = vadd.f32 %v378_v13, %v1469_v17  ;;  %v440_v28 = vadd.f32 %v398_v18, %v1474_v38  ;;  %v694_v17 = vld [vmem:[%s1659_s6 + $0x38] sm:$0xff]  ;;  %v693_v38 = vld [vmem:[%s1659_s6 + $0x30] sm:$0xff] }
 0x167   :  { %715 = vmatpush.msrb.mxu3 %v694_v17 }
 0x168   :  { %v819_v32 = vmul.f32 -1.442695, %v420_v25  ;;  %v820_v33 = vmul.f32 -1.442695, %v440_v28 }
 0x169   :  { %716 = vmatpush.msrb.mxu3 %v693_v38 }
 0x16a   :  { %840 = vpow2.f32 %v819_v32 }
 0x16b   :  { %842 = vpow2.f32 %v820_v33  ;;  %717 = vmatpush.msrb.mxu3 %v692_v60 }
 0x16d   :  { %718 = vmatpush.msrb.mxu3 %v691_v6 }
 0x16f   :  { %719 = vmatpush.msrb.mxu3 %v690_v8 }
 0x170   :  { %v841_v58 = vpop.eup %840 }
 0x171   :  { %v843_v61 = vpop.eup %842  ;;  %v424_v63 = vadd.f32 1.0, %v841_v58  ;;  %720 = vmatpush.msrb.mxu3 %v689_v10 }
 0x172   :  { %v444_v0 = vadd.f32 1.0, %v843_v61 }
 0x173   :  { %844 = vrcp.f32 %v424_v63  ;;  %721 = vmatpush.msrb.mxu3 %v688_v15  ;;  %v436_v1 = vand.u32 2147483648, %v424_v63  ;;  %v434_v11 = vand.u32 2147483647, %v424_v63  ;;  %vm430_vm10 = vweird.f32 %v424_v63 }
 0x174   :  { %846 = vrcp.f32 %v444_v0  ;;  %v456_v48 = vand.u32 2147483648, %v444_v0  ;;  %vm450_vm14 = vweird.f32 %v444_v0  ;;  %v454_v50 = vand.u32 2147483647, %v444_v0 }
 0x175   :  { %722 = vmatpush.msrb.mxu3 %v687_v27  ;;  %v437_v26 = vor.u32 1.1754944e-38, %v436_v1  ;;  %vm435_vm12 = vcmp.eq.f32.partialorder %v434_v11, 8.507059e+37 }
 0x176   :  { %v457_v53 = vor.u32 1.1754944e-38, %v456_v48  ;;  %vm455_vm0 = vcmp.eq.f32.partialorder %v454_v50, 8.507059e+37 }
 0x179   :  { %v845_v16 = vpop.eup %844 }
 0x17a   :  { %v847_v21 = vpop.eup %846  ;;  %v426_v24 = vmul.f32 %v845_v16, %v424_v63  ;;  %vm431_vm9 = vweird.f32 %v845_v16 }
 0x17b   :  { %v446_v5 = vmul.f32 %v847_v21, %v444_v0  ;;  %vm432_vm11 = vmor %vm430_vm10, %vm431_vm9  ;;  %vm451_vm13 = vweird.f32 %v847_v21 }
 0x17c   :  { %v427_v30 = vsub.f32 1.0, %v426_v24  ;;  %vm452_vm15 = vmor %vm450_vm14, %vm451_vm13 }
 0x17d   :  { %v447_v29 = vsub.f32 1.0, %v446_v5 }
 0x17e   :  { %v428_v7 = vmul.f32 %v845_v16, %v427_v30 }
 0x17f   :  { %v448_v43 = vmul.f32 %v847_v21, %v447_v29 }
 0x180   :  { %v429_v23 = vadd.f32 %v845_v16, %v428_v7 }
 0x181   :  { %v449_v47 = vadd.f32 %v847_v21, %v448_v43 }
 0x182   :  { %v433_v37 = vsel %vm432_vm11, %v845_v16, %v429_v23 }
 0x183   :  { %v438_v39 = vsel %vm435_vm12, %v437_v26, %v433_v37  ;;  %v453_v54 = vsel %vm452_vm15, %v847_v21, %v449_v47 }
 0x184   :  { %v460_v42 = vmul.f32 %v438_v39, %v418_v34  ;;  %v458_v59 = vsel %vm455_vm0, %v457_v53, %v453_v54 }
 0x186   :  { %v461_v45 = vadd.f32 %v460_v42, %v237_v40 }
 0x188   :  { %848 = vtanh.f32 %v461_v45 }
 0x18e   :  { %v849_v55 = vpop.eup %848 }
 0x18f   :  { %v463_v56 = vsub.f32 %v1499_v57, %v849_v55 }
 0x191   :  { %v464_v62 = vmul.f32 %v463_v56, %v458_v59 }
 0x193   :  { %v1578_v4 = vadd.f32 %v849_v55, %v464_v62 }
 0x195   :  { %483 = vmatmul.f32.vlgmr.msra.gmra.mxu1 %v1578_v4  ;;  %503 = vmatmul.f32.vlgmr.msra.gmra.mxu2 %v1578_v4 }
 0x196   :  { %523 = vmatmul.f32.vlgmr.msra.gmra.mxu3 %v1578_v4 }
 0x19e   :  { %723 = vmatmul.f32.vlgmr.msrb.gmra.mxu3 %v1499_v57  ;;  %v1592_v57 = vld [vmem:[%s1660_s7] ss:$0 sm:$0xff] }
 0x1a6   :  { %726 = vmatmul.f32.gmra.mxu3 %v1578_v4 }
 0x212   :  { %v484_v12 = vpop.f32.mrf.mxu1 }
 0x213   :  { %v485_v9 = vadd.f32 %v484_v12, %v1471_v20 }
 0x215   :  { %v527_v13 = vadd.f32 %v485_v9, %v1476_v41 }
 0x217   :  { %v821_v18 = vmul.f32 -1.442695, %v527_v13 }
 0x218   :  { %v504_v22 = vpop.f32.mrf.mxu2 }
 0x219   :  { %850 = vpow2.f32 %v821_v18  ;;  %v505_v25 = vadd.f32 %v504_v22, %v1482_v49  ;;  %v524_v28 = vpop.f32.mrf.mxu3 }
 0x21a   :  { %v525_v27 = vadd.f32 %v524_v28, %v1487_v2 }
 0x21b   :  { %v547_v31 = vadd.f32 %v505_v25, %v1478_v44 }
 0x21d   :  { %v822_v32 = vmul.f32 -1.442695, %v547_v31 }
 0x21f   :  { %v851_v33 = vpop.eup %850  ;;  %852 = vpow2.f32 %v822_v32 }
 0x220   :  { %v531_v35 = vadd.f32 1.0, %v851_v33 }
 0x221   :  { %v724_v36 = vpop.f32.mrf.mxu3 }
 0x222   :  { %854 = vrcp.f32 %v531_v35  ;;  %v1595_v41 = vadd.f32 %v1592_v57, %v724_v36  ;;  %v543_v0 = vand.u32 2147483648, %v531_v35  ;;  %v541_v8 = vand.u32 2147483647, %v531_v35 }
 0x223   :  { %vm537_vm2 = vweird.f32 %v531_v35 }
 0x224   :  { %736 = vmax.xlane.f32.xlu0 %v1595_v41  ;;  %v544_v21 = vor.u32 1.1754944e-38, %v543_v0  ;;  %vm542_vm4 = vcmp.eq.f32.partialorder %v541_v8, 8.507059e+37 }
 0x225   :  { %v853_v17 = vpop.eup %852 }
 0x226   :  { %v551_v38 = vadd.f32 1.0, %v853_v17 }
 0x228   :  { %v855_v58 = vpop.eup %854  ;;  %856 = vrcp.f32 %v551_v38  ;;  %v563_v23 = vand.u32 2147483648, %v551_v38  ;;  %vm557_vm6 = vweird.f32 %v551_v38  ;;  %v561_v26 = vand.u32 2147483647, %v551_v38 }
 0x229   :  { %v533_v44 = vmul.f32 %v855_v58, %v531_v35  ;;  %v727_v60 = vpop.f32.mrf.mxu3  ;;  %vm538_vm1 = vweird.f32 %v855_v58 }
 0x22a   :  { %v1599_v61 = vadd.f32 %v1592_v57, %v727_v60  ;;  %vm539_vm3 = vmor %vm537_vm2, %vm538_vm1  ;;  %v564_v37 = vor.u32 1.1754944e-38, %v563_v23  ;;  %vm562_vm8 = vcmp.eq.f32.partialorder %v561_v26, 8.507059e+37  ;;  %vm681_vm1 = vcmask 261120  }
 0x22b   :  { %v534_v63 = vsub.f32 1.0, %v533_v44 }
 0x22c   :  { %738 = vmax.xlane.f32.xlu0 %v1599_v61 }
 0x22d   :  { %v535_v6 = vmul.f32 %v855_v58, %v534_v63 }
 0x22e   :  { %v857_v10 = vpop.eup %856 }
 0x22f   :  { %v553_v15 = vmul.f32 %v857_v10, %v551_v38  ;;  %v536_v16 = vadd.f32 %v855_v58, %v535_v6  ;;  %vm558_vm5 = vweird.f32 %v857_v10 }
 0x230   :  { %vm559_vm7 = vmor %vm557_vm6, %vm558_vm5 }
 0x231   :  { %v554_v24 = vsub.f32 1.0, %v553_v15  ;;  %v540_v30 = vsel %vm539_vm3, %v855_v58, %v536_v16 }
 0x232   :  { %v545_v1 = vsel %vm542_vm4, %v544_v21, %v540_v30 }
 0x233   :  { %v567_v5 = vmul.f32 %v545_v1, %v525_v27  ;;  %v555_v7 = vmul.f32 %v857_v10, %v554_v24 }
 0x235   :  { %v568_v11 = vadd.f32 %v567_v5, %v1496_v3  ;;  %v556_v14 = vadd.f32 %v857_v10, %v555_v7 }
 0x237   :  { %858 = vtanh.f32 %v568_v11  ;;  %v560_v29 = vsel %vm559_vm7, %v857_v10, %v556_v14  ;;  %v243_v10 = vadd.f32 %v1520_v51, %v1491_v19 }
 0x238   :  { %v565_v40 = vsel %vm562_vm8, %v564_v37, %v560_v29 }
 0x23d   :  { %v859_v34 = vpop.eup %858 }
 0x23e   :  { %v570_v39 = vsub.f32 %v1578_v4, %v859_v34 }
 0x240   :  { %v571_v42 = vmul.f32 %v570_v39, %v565_v40 }
 0x242   :  { %v1605_v43 = vadd.f32 %v859_v34, %v571_v42 }
 0x244   :  { %590 = vmatmul.f32.vlgmr.msrb.gmra.mxu0 %v1605_v43  ;;  %610 = vmatmul.f32.vlgmr.msrb.gmra.mxu1 %v1605_v43 }
 0x245   :  { %630 = vmatmul.f32.vlgmr.msrb.gmra.mxu2 %v1605_v43  ;;  %729 = vmatmul.f32.gmra.mxu3 %v1605_v43 }
 0x297   :  { %v1611_v3 = vpop.xlane.xlu0 %736 }
 0x298   :  { %v744_v45 = vsub.f32 %v1595_v41, %v1611_v3 }
 0x29a   :  { %v748_v47 = vmul.f32 1.442695, %v744_v45 }
 0x29c   :  { %860 = vpow2.f32 %v748_v47 }
 0x29f   :  { %v1615_v48 = vpop.xlane.xlu0 %738 }
 0x2a0   :  { %v745_v50 = vsub.f32 %v1599_v61, %v1615_v48 }
 0x2a2   :  { %v861_v54 = vpop.eup %860  ;;  %v750_v55 = vmul.f32 1.442695, %v745_v50 }
 0x2a3   :  { %756 = vadd.xlane.f32.xlu2 %v861_v54 }
 0x2a4   :  { %862 = vpow2.f32 %v750_v55 }
 0x2aa   :  { %v863_v53 = vpop.eup %862 }
 0x2ab   :  { %758 = vadd.xlane.f32.xlu2 %v863_v53 }
 0x2c1   :  { %v591_v56 = vpop.f32.mrf.mxu0  ;;  %v611_v59 = vpop.f32.mrf.mxu1 }
 0x2c2   :  { %v592_v62 = vadd.f32 %v591_v56, %v1471_v20  ;;  %v612_v4 = vadd.f32 %v611_v59, %v1482_v49 }
 0x2c4   :  { %v634_v12 = vadd.f32 %v592_v62, %v1480_v46  ;;  %v654_v9 = vadd.f32 %v612_v4, %v1484_v52 }
 0x2c6   :  { %v823_v13 = vmul.f32 -1.442695, %v634_v12  ;;  %v824_v18 = vmul.f32 -1.442695, %v654_v9 }
 0x2c8   :  { %864 = vpow2.f32 %v823_v13  ;;  %v730_v22 = vpop.f32.mrf.mxu3  ;;  %v631_v58 = vpop.f32.mrf.mxu2 }
 0x2c9   :  { %866 = vpow2.f32 %v824_v18  ;;  %v1624_v25 = vadd.f32 %v1592_v57, %v730_v22  ;;  %v632_v0 = vadd.f32 %v631_v58, %v1487_v2 }
 0x2cb   :  { %740 = vmax.xlane.f32.xlu1 %v1624_v25 }
 0x2ce   :  { %v865_v28 = vpop.eup %864 }
 0x2cf   :  { %v867_v31 = vpop.eup %866  ;;  %v638_v32 = vadd.f32 1.0, %v865_v28 }
 0x2d0   :  { %v658_v20 = vadd.f32 1.0, %v867_v31 }
 0x2d1   :  { %868 = vrcp.f32 %v638_v32  ;;  %v650_v35 = vand.u32 2147483648, %v638_v32  ;;  %v648_v38 = vand.u32 2147483647, %v638_v32  ;;  %vm644_vm10 = vweird.f32 %v638_v32 }
 0x2d2   :  { %870 = vrcp.f32 %v658_v20  ;;  %v670_v27 = vand.u32 2147483648, %v658_v20  ;;  %vm664_vm14 = vweird.f32 %v658_v20  ;;  %v668_v30 = vand.u32 2147483647, %v658_v20 }
 0x2d3   :  { %v651_v60 = vor.u32 1.1754944e-38, %v650_v35  ;;  %vm649_vm12 = vcmp.eq.f32.partialorder %v648_v38, 8.507059e+37 }
 0x2d4   :  { %v671_v7 = vor.u32 1.1754944e-38, %v670_v27  ;;  %vm669_vm0 = vcmp.eq.f32.partialorder %v668_v30, 8.507059e+37 }
 0x2d7   :  { %v869_v49 = vpop.eup %868 }
 0x2d8   :  { %v871_v46 = vpop.eup %870  ;;  %v640_v33 = vmul.f32 %v869_v49, %v638_v32  ;;  %vm645_vm9 = vweird.f32 %v869_v49 }
 0x2d9   :  { %v660_v36 = vmul.f32 %v871_v46, %v658_v20  ;;  %vm646_vm11 = vmor %vm644_vm10, %vm645_vm9  ;;  %vm665_vm13 = vweird.f32 %v871_v46 }
 0x2da   :  { %v641_v52 = vsub.f32 1.0, %v640_v33  ;;  %vm666_vm15 = vmor %vm664_vm14, %vm665_vm13 }
 0x2db   :  { %v661_v63 = vsub.f32 1.0, %v660_v36 }
 0x2dc   :  { %v642_v17 = vmul.f32 %v869_v49, %v641_v52 }
 0x2dd   :  { %v662_v16 = vmul.f32 %v871_v46, %v661_v63 }
 0x2de   :  { %v643_v44 = vadd.f32 %v869_v49, %v642_v17 }
 0x2df   :  { %v663_v24 = vadd.f32 %v871_v46, %v662_v16 }
 0x2e0   :  { %v647_v6 = vsel %vm646_vm11, %v869_v49, %v643_v44 }
 0x2e1   :  { %v652_v8 = vsel %vm649_vm12, %v651_v60, %v647_v6  ;;  %v667_v1 = vsel %vm666_vm15, %v871_v46, %v663_v24 }
 0x2e2   :  { %v674_v15 = vmul.f32 %v652_v8, %v632_v0  ;;  %v672_v11 = vsel %vm669_vm0, %v671_v7, %v667_v1 }
 0x2e4   :  { %v675_v21 = vadd.f32 %v674_v15, %v243_v10 }
 0x2e6   :  { %872 = vtanh.f32 %v675_v21 }
 0x2ec   :  { %v873_v5 = vpop.eup %872 }
 0x2ed   :  { %v677_v2 = vsub.f32 %v1605_v43, %v873_v5 }
 0x2ef   :  { %v678_v14 = vmul.f32 %v677_v2, %v672_v11 }
 0x2f1   :  { %v679_v19 = vadd.f32 %v873_v5, %v678_v14 }
 0x2f3   :  { %732 = vmatmul.f32.gmra.mxu3 %v679_v19  ;;  %682 = vst.msk [vmem:[#allocation6] sm:$0xff] %vm681_vm1, %v679_v19 }
 0x2f4   :  { %796 = dma.vmem_to_hbm [thread:$0]  %s792_s19, 128, %s794_s21, [#allocation5]  }
 0x316   :  { %v757_v51 = vpop.xlane.xlu2 %756 }
 0x317   :  { %874 = vlog2.f32 %v757_v51 }
 0x31d   :  { %v875_v23 = vpop.eup %874 }
 0x31e   :  { %v765_v26 = vmul.f32 0.6931472, %v875_v23  ;;  %v759_v29 = vpop.xlane.xlu2 %758 }
 0x31f   :  { %876 = vlog2.f32 %v759_v29 }
 0x320   :  { %v772_v34 = vadd.f32 %v765_v26, %v1611_v3 }
 0x322   :  { %v776_v37 = vsub.f32 %v1595_v41, %v772_v34 }
 0x324   :  { %780 = vst [vmem:[%s1661_s8] sm:$0xff] %v776_v37 }
 0x325   :  { %v877_v39 = vpop.eup %876 }
 0x326   :  { %v767_v40 = vmul.f32 0.6931472, %v877_v39 }
 0x328   :  { %v773_v42 = vadd.f32 %v767_v40, %v1615_v48 }
 0x32a   :  { %v777_v43 = vsub.f32 %v1599_v61, %v773_v42 }
 0x32c   :  { %781 = vst [vmem:[%s1661_s8 + $0x8] sm:$0xff] %v777_v43 }
 0x33e   :  { %v741_v45 = vpop.xlane.xlu1 %740 }
 0x33f   :  { %v746_v47 = vsub.f32 %v1624_v25, %v741_v45 }
 0x341   :  { %v752_v3 = vmul.f32 1.442695, %v746_v47 }
 0x343   :  { %878 = vpow2.f32 %v752_v3 }
 0x349   :  { %v879_v41 = vpop.eup %878 }
 0x34a   :  { %760 = vadd.xlane.f32.xlu0 %v879_v41 }
 0x376   :  { %v733_v50 = vpop.f32.mrf.mxu3 }
 0x377   :  { %v734_v54 = vadd.f32 %v1592_v57, %v733_v50 }
 0x379   :  { %742 = vmax.xlane.f32.xlu1 %v734_v54 }
 0x3bd   :  { %v761_v55 = vpop.xlane.xlu0 %760 }
 0x3be   :  { %880 = vlog2.f32 %v761_v55 }
 0x3c4   :  { %v881_v48 = vpop.eup %880 }
 0x3c5   :  { %v769_v53 = vmul.f32 0.6931472, %v881_v48 }
 0x3c7   :  { %v774_v61 = vadd.f32 %v769_v53, %v741_v45 }
 0x3c9   :  { %v778_v56 = vsub.f32 %v1624_v25, %v774_v61 }
 0x3cb   :  { %782 = vst [vmem:[%s1661_s8 + $0x10] sm:$0xff] %v778_v56 }
 0x3ec   :  { %v743_v59 = vpop.xlane.xlu1 %742 }
 0x3ed   :  { %v747_v62 = vsub.f32 %v734_v54, %v743_v59 }
 0x3ef   :  { %v754_v4 = vmul.f32 1.442695, %v747_v62 }
 0x3f1   :  { %882 = vpow2.f32 %v754_v4 }
 0x3f7   :  { %v883_v12 = vpop.eup %882 }
 0x3f8   :  { %762 = vadd.xlane.f32.xlu1 %v883_v12 }
 0x46b   :  { %v763_v57 = vpop.xlane.xlu1 %762 }
 0x46c   :  { %884 = vlog2.f32 %v763_v57 }
 0x472   :  { %v885_v9 = vpop.eup %884 }
 0x473   :  { %v771_v13 = vmul.f32 0.6931472, %v885_v9 }
 0x475   :  { %v775_v18 = vadd.f32 %v771_v13, %v743_v59 }
 0x477   :  { %v779_v22 = vsub.f32 %v734_v54, %v775_v18 }
 0x479   :  { %783 = vst [vmem:[%s1661_s8 + $0x18] sm:$0xff] %v779_v22 }
 0x47a   :  { %936 = dma.done.wait [#allocation5], 128  }
 0x47b   :  { %937 = vsyncadd [#allocation5], 4294967168 }
 0x47c   :  { %803 = vsyncpa [#allocation4], 1 }
 0x47d   :  { %804 = vsyncpa [#allocation5], 1 }

</bundles_post_ra>
